<compile_context>
chip_gen: v5e
topology: v5e:2x2
jax: 0.10.0
libtpu: 0.0.40
codegen_flags: <defaults>
</compile_context>

<pallas_src>
import functools

import jax
import jax.numpy as jnp
from jax import lax
from jax.experimental import pallas as pl
from jax.experimental.pallas import tpu as pltpu

N_NODE_FEATURES = 8        # F
N_EDGE_FEATURES = 100      # C (GaussianExpansion num_centers)
C_PAD = 128                # lane-padded edge-feature width
NUM_BLOCKS = 2
GE_START, GE_END, GE_CENTERS = 0.0, 5.0, 100
BN_EPS = 1e-5
NEG_BIG = 1e30
SLAB_COLS = 32             # lane width of the packed parameter slab


def _vmem_spec():
    return pl.BlockSpec(memory_space=pltpu.MemorySpace.VMEM)


def _round8(r):
    return (r + 7) // 8 * 8


# ----------------------- packed parameter slab layout -----------------------
def _slab_layout(F, num_blocks):
    """Static (Python) row layout of the single packed f32 parameter slab."""
    layout = {}
    row = [0]

    def add(name, r, c):
        layout[name] = (row[0], r, c)
        row[0] += _round8(r)           # 8-row alignment -> tile-aligned slices

    for b in range(num_blocks):
        add(f"b{b}_wi", F, 2 * F)
        add(f"b{b}_wj", F, 2 * F)
        add(f"b{b}_we", C_PAD, 2 * F)
        add(f"b{b}_b", 1, 2 * F)
        add(f"b{b}_scale", 1, F)
        add(f"b{b}_shift", 1, F)
    add("w1a", F, 32)
    add("w1b", F, 32)
    add("w1c", F, 32)
    add("b1", 1, 32)
    add("w2", 32, 16)
    add("b2", 1, 16)
    add("wo", 16, 1)
    add("bo", 1, 1)
    return layout, row[0]


def _pack_param_slab(params, F, num_blocks):
    layout, rows = _slab_layout(F, num_blocks)
    slab = jnp.zeros((rows, SLAB_COLS), jnp.float32)
    pieces = []
    for i, blk in enumerate(params["blocks"]):
        pieces += [(f"b{i}_wi", blk["w_i"]), (f"b{i}_wj", blk["w_j"]),
                   (f"b{i}_we", blk["w_e"]), (f"b{i}_b", blk["b"]),
                   (f"b{i}_scale", blk["bn_scale"]),
                   (f"b{i}_shift", blk["bn_shift"])]
    pieces += [("w1a", params["w1a"]), ("w1b", params["w1b"]),
               ("w1c", params["w1c"]), ("b1", params["b1"]),
               ("w2", params["w2"]), ("b2", params["b2"]),
               ("wo", params["wo"]), ("bo", params["bo"])]
    for name, arr in pieces:
        off, r, c = layout[name]
        assert arr.shape == (r, c), (name, arr.shape, (r, c))
        slab = slab.at[off:off + r, :c].set(arr.astype(jnp.float32))
    return slab, layout


def _read(slab_ref, layout, name):
    off, r, c = layout[name]
    return slab_ref[pl.ds(off, r), pl.ds(0, c)]     # static slices -> free


# --------------------------- fused forward kernel ---------------------------
def fused_cgcnn_kernel(d_ref, xin_ref, gsrc_ref, gdst_ref, gdstT_ref,
                       pool_ref, slab_ref, o_ref, *,
                       F, B, num_blocks, layout, ge_start, ge_width):
    E = d_ref.shape[0]

    # --- GaussianExpansion: exp(-(d - mu_k)^2 / width^2), lanes padded to 128.
    # Padded lanes (k >= 100) hit zero rows of w_e, so they never contribute.
    # TODO(synk): formula assumed exp(-(d-mu)^2/width^2) with width = grid
    # spacing; verify against the reference GaussianExpansion implementation.
    k = lax.broadcasted_iota(jnp.int32, (E, C_PAD), 1).astype(jnp.float32)
    centers = ge_start + k * ge_width
    diff = d_ref[...] - centers                                   # [E,1]-[E,128]
    inv_w2 = 1.0 / (ge_width * ge_width)
    e_bf = jnp.exp(-(diff * diff) * inv_w2).astype(jnp.bfloat16)  # [E, 128]

    xin = xin_ref[...]                                            # [N, F+B] f32
    x = xin[:, :F]                                                # node features
    negmask = xin[:, F:F + B]                                     # [N, B]: 0 / -1e30

    gsrc = gsrc_ref[...]                                          # [E, N] bf16 (src j)
    gdst = gdst_ref[...]                                          # [E, N] bf16 (dst i)
    gdstT = gdstT_ref[...]                                        # [N, E] bf16 (scatter)

    for blk in range(num_blocks):
        wi = _read(slab_ref, layout, f"b{blk}_wi").astype(jnp.bfloat16)
        wj = _read(slab_ref, layout, f"b{blk}_wj").astype(jnp.bfloat16)
        we = _read(slab_ref, layout, f"b{blk}_we").astype(jnp.bfloat16)
        bb = _read(slab_ref, layout, f"b{blk}_b")
        bscale = _read(slab_ref, layout, f"b{blk}_scale")
        bshift = _read(slab_ref, layout, f"b{blk}_shift")

        # Gather endpoint features via one-hot matmuls (bf16 MXU, f32 acc).
        x_bf = x.astype(jnp.bfloat16)
        x_j = jnp.dot(gsrc, x_bf, preferred_element_type=jnp.float32)   # [E, F]
        x_i = jnp.dot(gdst, x_bf, preferred_element_type=jnp.float32)   # [E, F]

        # Fused gate/softplus linear: z=[x_i|x_j|e] @ [Wf|Ws] as split matmuls.
        lin = (jnp.dot(x_i.astype(jnp.bfloat16), wi,
                       preferred_element_type=jnp.float32)
               + jnp.dot(x_j.astype(jnp.bfloat16), wj,
                         preferred_element_type=jnp.float32)
               + jnp.dot(e_bf, we, preferred_element_type=jnp.float32)
               + bb)                                                    # [E, 2F]
        lin_f = lin[:, :F]
        lin_s = lin[:, F:]
        gate = 0.5 * (jnp.tanh(0.5 * lin_f) + 1.0)                      # sigmoid (EUP)
        sp = (jnp.maximum(lin_s, 0.0)
              + jnp.log(1.0 + jnp.exp(-jnp.abs(lin_s))))                # softplus
        msg = (gate * sp).astype(jnp.bfloat16)                          # [E, F]

        # Scatter-add to target nodes with the pre-transposed one-hot (MXU).
        aggr = jnp.dot(gdstT, msg, preferred_element_type=jnp.float32)  # [N, F]
        # Eval-mode BatchNorm folded into scale/shift, then residual.
        x = x + aggr * bscale + bshift

    # ---------------- readout: add / mean / max pooling + MLP head ----------
    pool = pool_ref[...]                                                # [2B, N]
    pooled = jnp.dot(pool, x, preferred_element_type=jnp.float32)       # [2B, F]
    addp = pooled[:B]                                                   # sum pool
    meanp = pooled[B:]                                                  # mean pool

    rows = []
    for b in range(B):                                                  # static B
        masked = x + negmask[:, b:b + 1]                                # [N, F]
        rows.append(jnp.max(masked, axis=0, keepdims=True))             # [1, F]
    maxp = jnp.concatenate(rows, axis=0)                                # [B, F]
    # TODO(synk): for large B replace per-graph loop with one batched masked
    # reduce; also guard empty graphs (max pool would emit -1e30).

    # dense head: cat([mean, max, add]) @ W1 + b1 (split weights), ReLU, ...
    # Dropout(0.2) is inference-mode identity.
    h = (jnp.dot(meanp, _read(slab_ref, layout, "w1a"),
                 preferred_element_type=jnp.float32)
         + jnp.dot(maxp, _read(slab_ref, layout, "w1b"),
                   preferred_element_type=jnp.float32)
         + jnp.dot(addp, _read(slab_ref, layout, "w1c"),
                   preferred_element_type=jnp.float32)
         + _read(slab_ref, layout, "b1"))
    h = jnp.maximum(h, 0.0)
    h = jnp.maximum(jnp.dot(h, _read(slab_ref, layout, "w2"),
                            preferred_element_type=jnp.float32)
                    + _read(slab_ref, layout, "b2"), 0.0)
    o_ref[...] = (jnp.dot(h, _read(slab_ref, layout, "wo"),
                          preferred_element_type=jnp.float32)
                  + _read(slab_ref, layout, "bo"))


# ------------------------------ parameters ---------------------------------
def init_params(key, F, C, num_blocks):
    def linear(k, fan_in, fan_out):
        k1, k2 = jax.random.split(k)
        bound = 1.0 / jnp.sqrt(jnp.float32(fan_in))
        w = jax.random.uniform(k1, (fan_in, fan_out), jnp.float32, -bound, bound)
        b = jax.random.uniform(k2, (1, fan_out), jnp.float32, -bound, bound)
        return w, b

    blocks = []
    for _ in range(num_blocks):
        key, kf, ks = jax.random.split(key, 3)
        wf, bf = linear(kf, 2 * F + C, F)   # lin_f: Linear(2F + C, F)
        ws, bs = linear(ks, 2 * F + C, F)   # lin_s: Linear(2F + C, F)
        gamma = jnp.ones((1, F), jnp.float32)
        beta = jnp.zeros((1, F), jnp.float32)
        rmean = jnp.zeros((1, F), jnp.float32)
        rvar = jnp.ones((1, F), jnp.float32)
        # Stack gate | softplus weights column-wise, rows ordered [x_i|x_j|e].
        w_i = jnp.concatenate([wf[:F], ws[:F]], axis=1)              # [F, 2F]
        w_j = jnp.concatenate([wf[F:2 * F], ws[F:2 * F]], axis=1)    # [F, 2F]
        w_e = jnp.concatenate([wf[2 * F:], ws[2 * F:]], axis=1)      # [C, 2F]
        w_e = jnp.pad(w_e, ((0, C_PAD - C), (0, 0)))                 # zero-pad rows
        b_fs = jnp.concatenate([bf, bs], axis=1)                     # [1, 2F]
        # Fold eval-mode BatchNorm into scale & shift.
        bn_scale = gamma * jax.lax.rsqrt(rvar + BN_EPS)
        bn_shift = beta - rmean * bn_scale
        blocks.append(dict(w_i=w_i, w_j=w_j, w_e=w_e, b=b_fs,
                           bn_scale=bn_scale, bn_shift=bn_shift))

    key, k1, k2, k3 = jax.random.split(key, 4)
    w1, b1 = linear(k1, 3 * F, 32)
    w2, b2 = linear(k2, 32, 16)
    wo, bo = linear(k3, 16, 1)
    return dict(blocks=blocks,
                w1a=w1[:F], w1b=w1[F:2 * F], w1c=w1[2 * F:], b1=b1,
                w2=w2, b2=b2, wo=wo, bo=bo)


# ------------------------------- forward ------------------------------------
def cgcnn_forward(params, x, edge_index, edge_attr, batch_index, num_graphs):
    N, F = x.shape
    E = edge_attr.shape[0]
    num_blocks = len(params["blocks"])

    d = edge_attr.astype(jnp.float32).reshape(E, 1)
    # PyG convention: edge_index row 0 = source j, row 1 = target i.
    src, dst = edge_index[0], edge_index[1]
    gsrc = jax.nn.one_hot(src, N, dtype=jnp.bfloat16)                # [E, N]
    gdst = jax.nn.one_hot(dst, N, dtype=jnp.bfloat16)                # [E, N]
    gdstT = jnp.transpose(gdst)                                      # [N, E] pre-T

    pT = jax.nn.one_hot(batch_index, num_graphs, dtype=jnp.float32)  # [N, B]
    pool_add = jnp.transpose(pT)                                     # [B, N]
    counts = jnp.maximum(jnp.sum(pool_add, axis=1, keepdims=True), 1.0)
    pool_mean = pool_add / counts                                    # normalized
    pool = jnp.concatenate([pool_add, pool_mean], axis=0)            # [2B, N]

    negmask = (pT - 1.0) * NEG_BIG                                   # [N, B]
    xin = jnp.concatenate([x.astype(jnp.float32), negmask], axis=1)  # [N, F+B]

    slab, layout = _pack_param_slab(params, F, num_blocks)
    ge_width = (GE_END - GE_START) / (GE_CENTERS - 1)

    kernel = functools.partial(
        fused_cgcnn_kernel, F=F, B=num_graphs, num_blocks=num_blocks,
        layout=layout, ge_start=GE_START, ge_width=ge_width)

    inputs = [d, xin, gsrc, gdst, gdstT, pool, slab]
    return pl.pallas_call(
        kernel,
        out_shape=jax.ShapeDtypeStruct((num_graphs, 1), jnp.float32),
        in_specs=[_vmem_spec() for _ in inputs],
        out_specs=_vmem_spec(),
        compiler_params=pltpu.CompilerParams(vmem_limit_bytes=32 * 1024 * 1024),
    )(*inputs)


# --------------------------------- main -------------------------------------
if __name__ == "__main__":
    F, C = N_NODE_FEATURES, N_EDGE_FEATURES
    N, E, B = 8, 16, 2

    key = jax.random.PRNGKey(0)
    kx, ks0, kd0, ks1, kd1, ke, kp = jax.random.split(key, 7)

    x = jax.random.normal(kx, (N, F), dtype=jnp.float32)
    batch_index = jnp.array([0, 0, 0, 0, 1, 1, 1, 1], dtype=jnp.int32)

    # Edges kept within their own graph (nodes 0-3 -> graph 0, 4-7 -> graph 1).
    src = jnp.concatenate([jax.random.randint(ks0, (E // 2,), 0, 4),
                           jax.random.randint(ks1, (E // 2,), 4, 8)])
    dst = jnp.concatenate([jax.random.randint(kd0, (E // 2,), 0, 4),
                           jax.random.randint(kd1, (E // 2,), 4, 8)])
    edge_index = jnp.stack([src, dst]).astype(jnp.int32)                # [2, E]
    edge_attr = jax.random.uniform(ke, (E,), jnp.float32, 0.0, 5.0)     # distances

    params = init_params(kp, F, C, NUM_BLOCKS)

    out = cgcnn_forward(params, x, edge_index, edge_attr, batch_index, num_graphs=B)
    out = jax.block_until_ready(out)
    assert out.shape == (B, 1) and out.dtype == jnp.float32
    print("KERNEL_OK")
</pallas_src>

<mosaic_0001>
module attributes {stable_mosaic.version = 11 : i64} {
  func.func @fused_cgcnn_kernel(%arg0: memref<16x1xf32, #tpu.memory_space<vmem>>, %arg1: memref<8x10xf32, #tpu.memory_space<vmem>>, %arg2: memref<16x8xbf16, #tpu.memory_space<vmem>>, %arg3: memref<16x8xbf16, #tpu.memory_space<vmem>>, %arg4: memref<8x16xbf16, #tpu.memory_space<vmem>>, %arg5: memref<4x8xf32, #tpu.memory_space<vmem>>, %arg6: memref<432x32xf32, #tpu.memory_space<vmem>>, %arg7: memref<2x1xf32, #tpu.memory_space<vmem>>) attributes {dimension_semantics = [], scalar_prefetch = 0 : i64, scratch_operands = 0 : i64, tpu.core_type = #tpu.core_type<tc>} {
    %0 = tpu.iota {dimensions = array<i32: 1>} : vector<16x128xi32>
    %1 = arith.sitofp %0 : vector<16x128xi32> to vector<16x128xf32>
    %cst = arith.constant 0.0505050495 : f32
    %2 = vector.broadcast %cst : f32 to vector<16x128xf32>
    %3 = arith.mulf %1, %2 : vector<16x128xf32>
    %cst_0 = arith.constant 0.000000e+00 : f32
    %4 = vector.broadcast %cst_0 : f32 to vector<16x128xf32>
    %5 = arith.addf %4, %3 : vector<16x128xf32>
    %c0 = arith.constant 0 : index
    %c0_1 = arith.constant 0 : index
    %6 = vector.load %arg0[%c0, %c0_1] : memref<16x1xf32, #tpu.memory_space<vmem>>, vector<16x1xf32>
    %7 = vector.broadcast %6 : vector<16x1xf32> to vector<16x128xf32>
    %8 = arith.subf %7, %5 : vector<16x128xf32>
    %9 = arith.mulf %8, %8 : vector<16x128xf32>
    %cst_2 = arith.constant 0.000000e+00 : f32
    %10 = vector.broadcast %cst_2 : f32 to vector<16x128xf32>
    %11 = arith.subf %10, %9 : vector<16x128xf32>
    %cst_3 = arith.constant 3.920400e+02 : f32
    %12 = vector.broadcast %cst_3 : f32 to vector<16x128xf32>
    %13 = arith.mulf %11, %12 : vector<16x128xf32>
    %14 = math.exp %13 : vector<16x128xf32>
    %15 = arith.truncf %14 : vector<16x128xf32> to vector<16x128xbf16>
    %c0_4 = arith.constant 0 : index
    %c0_5 = arith.constant 0 : index
    %16 = vector.load %arg1[%c0_4, %c0_5] : memref<8x10xf32, #tpu.memory_space<vmem>>, vector<8x10xf32>
    %17 = vector.extract_strided_slice %16 {offsets = [0, 0], sizes = [8, 8], strides = [1, 1]} : vector<8x10xf32> to vector<8x8xf32>
    %18 = vector.extract_strided_slice %16 {offsets = [0, 8], sizes = [8, 2], strides = [1, 1]} : vector<8x10xf32> to vector<8x2xf32>
    %c0_6 = arith.constant 0 : index
    %c0_7 = arith.constant 0 : index
    %19 = vector.load %arg2[%c0_6, %c0_7] : memref<16x8xbf16, #tpu.memory_space<vmem>>, vector<16x8xbf16>
    %c0_8 = arith.constant 0 : index
    %c0_9 = arith.constant 0 : index
    %20 = vector.load %arg3[%c0_8, %c0_9] : memref<16x8xbf16, #tpu.memory_space<vmem>>, vector<16x8xbf16>
    %c0_10 = arith.constant 0 : index
    %c0_11 = arith.constant 0 : index
    %21 = vector.load %arg4[%c0_10, %c0_11] : memref<8x16xbf16, #tpu.memory_space<vmem>>, vector<8x16xbf16>
    %c0_12 = arith.constant 0 : index
    %c0_13 = arith.constant 0 : index
    %22 = vector.load %arg6[%c0_12, %c0_13] : memref<432x32xf32, #tpu.memory_space<vmem>>, vector<8x16xf32>
    %23 = arith.truncf %22 : vector<8x16xf32> to vector<8x16xbf16>
    %c8 = arith.constant 8 : index
    %c0_14 = arith.constant 0 : index
    %24 = vector.load %arg6[%c8, %c0_14] : memref<432x32xf32, #tpu.memory_space<vmem>>, vector<8x16xf32>
    %25 = arith.truncf %24 : vector<8x16xf32> to vector<8x16xbf16>
    %c16 = arith.constant 16 : index
    %c0_15 = arith.constant 0 : index
    %26 = vector.load %arg6[%c16, %c0_15] : memref<432x32xf32, #tpu.memory_space<vmem>>, vector<128x16xf32>
    %27 = arith.truncf %26 : vector<128x16xf32> to vector<128x16xbf16>
    %c144 = arith.constant 144 : index
    %c0_16 = arith.constant 0 : index
    %28 = vector.load %arg6[%c144, %c0_16] : memref<432x32xf32, #tpu.memory_space<vmem>>, vector<1x16xf32>
    %c152 = arith.constant 152 : index
    %c0_17 = arith.constant 0 : index
    %29 = vector.load %arg6[%c152, %c0_17] : memref<432x32xf32, #tpu.memory_space<vmem>>, vector<1x8xf32>
    %c160 = arith.constant 160 : index
    %c0_18 = arith.constant 0 : index
    %30 = vector.load %arg6[%c160, %c0_18] : memref<432x32xf32, #tpu.memory_space<vmem>>, vector<1x8xf32>
    %31 = arith.truncf %17 : vector<8x8xf32> to vector<8x8xbf16>
    %cst_19 = arith.constant dense<0.000000e+00> : vector<16x8xf32>
    %32 = tpu.matmul %19, %31, %cst_19 {dimension_numbers = #tpu.dot_dimension_numbers<[1], [0], [0], [1], [0, 0, 1, 1], [], []>} : vector<16x8xbf16>, vector<8x8xbf16>, vector<16x8xf32> -> vector<16x8xf32>
    %cst_20 = arith.constant dense<0.000000e+00> : vector<16x8xf32>
    %33 = tpu.matmul %20, %31, %cst_20 {dimension_numbers = #tpu.dot_dimension_numbers<[1], [0], [0], [1], [0, 0, 1, 1], [], []>} : vector<16x8xbf16>, vector<8x8xbf16>, vector<16x8xf32> -> vector<16x8xf32>
    %34 = arith.truncf %33 : vector<16x8xf32> to vector<16x8xbf16>
    %cst_21 = arith.constant dense<0.000000e+00> : vector<16x16xf32>
    %35 = tpu.matmul %34, %23, %cst_21 {dimension_numbers = #tpu.dot_dimension_numbers<[1], [0], [0], [1], [0, 0, 1, 1], [], []>} : vector<16x8xbf16>, vector<8x16xbf16>, vector<16x16xf32> -> vector<16x16xf32>
    %36 = arith.truncf %32 : vector<16x8xf32> to vector<16x8xbf16>
    %cst_22 = arith.constant dense<0.000000e+00> : vector<16x16xf32>
    %37 = tpu.matmul %36, %25, %cst_22 {dimension_numbers = #tpu.dot_dimension_numbers<[1], [0], [0], [1], [0, 0, 1, 1], [], []>} : vector<16x8xbf16>, vector<8x16xbf16>, vector<16x16xf32> -> vector<16x16xf32>
    %38 = arith.addf %35, %37 : vector<16x16xf32>
    %cst_23 = arith.constant dense<0.000000e+00> : vector<16x16xf32>
    %39 = tpu.matmul %15, %27, %cst_23 {dimension_numbers = #tpu.dot_dimension_numbers<[1], [0], [0], [1], [0, 0, 1, 1], [], []>} : vector<16x128xbf16>, vector<128x16xbf16>, vector<16x16xf32> -> vector<16x16xf32>
    %40 = arith.addf %38, %39 : vector<16x16xf32>
    %41 = vector.broadcast %28 : vector<1x16xf32> to vector<16x16xf32>
    %42 = arith.addf %40, %41 : vector<16x16xf32>
    %43 = vector.extract_strided_slice %42 {offsets = [0, 0], sizes = [16, 8], strides = [1, 1]} : vector<16x16xf32> to vector<16x8xf32>
    %44 = vector.extract_strided_slice %42 {offsets = [0, 8], sizes = [16, 8], strides = [1, 1]} : vector<16x16xf32> to vector<16x8xf32>
    %cst_24 = arith.constant 5.000000e-01 : f32
    %45 = vector.broadcast %cst_24 : f32 to vector<16x8xf32>
    %46 = arith.mulf %45, %43 : vector<16x8xf32>
    %47 = math.tanh %46 : vector<16x8xf32>
    %cst_25 = arith.constant 1.000000e+00 : f32
    %48 = vector.broadcast %cst_25 : f32 to vector<16x8xf32>
    %49 = arith.addf %47, %48 : vector<16x8xf32>
    %cst_26 = arith.constant 5.000000e-01 : f32
    %50 = vector.broadcast %cst_26 : f32 to vector<16x8xf32>
    %51 = arith.mulf %50, %49 : vector<16x8xf32>
    %cst_27 = arith.constant 0.000000e+00 : f32
    %52 = vector.broadcast %cst_27 : f32 to vector<16x8xf32>
    %53 = arith.maximumf %44, %52 : vector<16x8xf32>
    %54 = math.absf %44 : vector<16x8xf32>
    %cst_28 = arith.constant 0.000000e+00 : f32
    %55 = vector.broadcast %cst_28 : f32 to vector<16x8xf32>
    %56 = arith.subf %55, %54 : vector<16x8xf32>
    %57 = math.exp %56 : vector<16x8xf32>
    %cst_29 = arith.constant 1.000000e+00 : f32
    %58 = vector.broadcast %cst_29 : f32 to vector<16x8xf32>
    %59 = arith.addf %58, %57 : vector<16x8xf32>
    %60 = math.log %59 : vector<16x8xf32>
    %61 = arith.addf %53, %60 : vector<16x8xf32>
    %62 = arith.mulf %51, %61 : vector<16x8xf32>
    %63 = arith.truncf %62 : vector<16x8xf32> to vector<16x8xbf16>
    %cst_30 = arith.constant dense<0.000000e+00> : vector<8x8xf32>
    %64 = tpu.matmul %21, %63, %cst_30 {dimension_numbers = #tpu.dot_dimension_numbers<[1], [0], [0], [1], [0, 0, 1, 1], [], []>} : vector<8x16xbf16>, vector<16x8xbf16>, vector<8x8xf32> -> vector<8x8xf32>
    %65 = vector.broadcast %29 : vector<1x8xf32> to vector<8x8xf32>
    %66 = arith.mulf %64, %65 : vector<8x8xf32>
    %67 = arith.addf %17, %66 : vector<8x8xf32>
    %68 = vector.broadcast %30 : vector<1x8xf32> to vector<8x8xf32>
    %69 = arith.addf %67, %68 : vector<8x8xf32>
    %c168 = arith.constant 168 : index
    %c0_31 = arith.constant 0 : index
    %70 = vector.load %arg6[%c168, %c0_31] : memref<432x32xf32, #tpu.memory_space<vmem>>, vector<8x16xf32>
    %71 = arith.truncf %70 : vector<8x16xf32> to vector<8x16xbf16>
    %c176 = arith.constant 176 : index
    %c0_32 = arith.constant 0 : index
    %72 = vector.load %arg6[%c176, %c0_32] : memref<432x32xf32, #tpu.memory_space<vmem>>, vector<8x16xf32>
    %73 = arith.truncf %72 : vector<8x16xf32> to vector<8x16xbf16>
    %c184 = arith.constant 184 : index
    %c0_33 = arith.constant 0 : index
    %74 = vector.load %arg6[%c184, %c0_33] : memref<432x32xf32, #tpu.memory_space<vmem>>, vector<128x16xf32>
    %75 = arith.truncf %74 : vector<128x16xf32> to vector<128x16xbf16>
    %c312 = arith.constant 312 : index
    %c0_34 = arith.constant 0 : index
    %76 = vector.load %arg6[%c312, %c0_34] : memref<432x32xf32, #tpu.memory_space<vmem>>, vector<1x16xf32>
    %c320 = arith.constant 320 : index
    %c0_35 = arith.constant 0 : index
    %77 = vector.load %arg6[%c320, %c0_35] : memref<432x32xf32, #tpu.memory_space<vmem>>, vector<1x8xf32>
    %c328 = arith.constant 328 : index
    %c0_36 = arith.constant 0 : index
    %78 = vector.load %arg6[%c328, %c0_36] : memref<432x32xf32, #tpu.memory_space<vmem>>, vector<1x8xf32>
    %79 = arith.truncf %69 : vector<8x8xf32> to vector<8x8xbf16>
    %cst_37 = arith.constant dense<0.000000e+00> : vector<16x8xf32>
    %80 = tpu.matmul %19, %79, %cst_37 {dimension_numbers = #tpu.dot_dimension_numbers<[1], [0], [0], [1], [0, 0, 1, 1], [], []>} : vector<16x8xbf16>, vector<8x8xbf16>, vector<16x8xf32> -> vector<16x8xf32>
    %cst_38 = arith.constant dense<0.000000e+00> : vector<16x8xf32>
    %81 = tpu.matmul %20, %79, %cst_38 {dimension_numbers = #tpu.dot_dimension_numbers<[1], [0], [0], [1], [0, 0, 1, 1], [], []>} : vector<16x8xbf16>, vector<8x8xbf16>, vector<16x8xf32> -> vector<16x8xf32>
    %82 = arith.truncf %81 : vector<16x8xf32> to vector<16x8xbf16>
    %cst_39 = arith.constant dense<0.000000e+00> : vector<16x16xf32>
    %83 = tpu.matmul %82, %71, %cst_39 {dimension_numbers = #tpu.dot_dimension_numbers<[1], [0], [0], [1], [0, 0, 1, 1], [], []>} : vector<16x8xbf16>, vector<8x16xbf16>, vector<16x16xf32> -> vector<16x16xf32>
    %84 = arith.truncf %80 : vector<16x8xf32> to vector<16x8xbf16>
    %cst_40 = arith.constant dense<0.000000e+00> : vector<16x16xf32>
    %85 = tpu.matmul %84, %73, %cst_40 {dimension_numbers = #tpu.dot_dimension_numbers<[1], [0], [0], [1], [0, 0, 1, 1], [], []>} : vector<16x8xbf16>, vector<8x16xbf16>, vector<16x16xf32> -> vector<16x16xf32>
    %86 = arith.addf %83, %85 : vector<16x16xf32>
    %cst_41 = arith.constant dense<0.000000e+00> : vector<16x16xf32>
    %87 = tpu.matmul %15, %75, %cst_41 {dimension_numbers = #tpu.dot_dimension_numbers<[1], [0], [0], [1], [0, 0, 1, 1], [], []>} : vector<16x128xbf16>, vector<128x16xbf16>, vector<16x16xf32> -> vector<16x16xf32>
    %88 = arith.addf %86, %87 : vector<16x16xf32>
    %89 = vector.broadcast %76 : vector<1x16xf32> to vector<16x16xf32>
    %90 = arith.addf %88, %89 : vector<16x16xf32>
    %91 = vector.extract_strided_slice %90 {offsets = [0, 0], sizes = [16, 8], strides = [1, 1]} : vector<16x16xf32> to vector<16x8xf32>
    %92 = vector.extract_strided_slice %90 {offsets = [0, 8], sizes = [16, 8], strides = [1, 1]} : vector<16x16xf32> to vector<16x8xf32>
    %cst_42 = arith.constant 5.000000e-01 : f32
    %93 = vector.broadcast %cst_42 : f32 to vector<16x8xf32>
    %94 = arith.mulf %93, %91 : vector<16x8xf32>
    %95 = math.tanh %94 : vector<16x8xf32>
    %cst_43 = arith.constant 1.000000e+00 : f32
    %96 = vector.broadcast %cst_43 : f32 to vector<16x8xf32>
    %97 = arith.addf %95, %96 : vector<16x8xf32>
    %cst_44 = arith.constant 5.000000e-01 : f32
    %98 = vector.broadcast %cst_44 : f32 to vector<16x8xf32>
    %99 = arith.mulf %98, %97 : vector<16x8xf32>
    %cst_45 = arith.constant 0.000000e+00 : f32
    %100 = vector.broadcast %cst_45 : f32 to vector<16x8xf32>
    %101 = arith.maximumf %92, %100 : vector<16x8xf32>
    %102 = math.absf %92 : vector<16x8xf32>
    %cst_46 = arith.constant 0.000000e+00 : f32
    %103 = vector.broadcast %cst_46 : f32 to vector<16x8xf32>
    %104 = arith.subf %103, %102 : vector<16x8xf32>
    %105 = math.exp %104 : vector<16x8xf32>
    %cst_47 = arith.constant 1.000000e+00 : f32
    %106 = vector.broadcast %cst_47 : f32 to vector<16x8xf32>
    %107 = arith.addf %106, %105 : vector<16x8xf32>
    %108 = math.log %107 : vector<16x8xf32>
    %109 = arith.addf %101, %108 : vector<16x8xf32>
    %110 = arith.mulf %99, %109 : vector<16x8xf32>
    %111 = arith.truncf %110 : vector<16x8xf32> to vector<16x8xbf16>
    %cst_48 = arith.constant dense<0.000000e+00> : vector<8x8xf32>
    %112 = tpu.matmul %21, %111, %cst_48 {dimension_numbers = #tpu.dot_dimension_numbers<[1], [0], [0], [1], [0, 0, 1, 1], [], []>} : vector<8x16xbf16>, vector<16x8xbf16>, vector<8x8xf32> -> vector<8x8xf32>
    %113 = vector.broadcast %77 : vector<1x8xf32> to vector<8x8xf32>
    %114 = arith.mulf %112, %113 : vector<8x8xf32>
    %115 = arith.addf %69, %114 : vector<8x8xf32>
    %116 = vector.broadcast %78 : vector<1x8xf32> to vector<8x8xf32>
    %117 = arith.addf %115, %116 : vector<8x8xf32>
    %c0_49 = arith.constant 0 : index
    %c0_50 = arith.constant 0 : index
    %118 = vector.load %arg5[%c0_49, %c0_50] : memref<4x8xf32, #tpu.memory_space<vmem>>, vector<4x8xf32>
    %cst_51 = arith.constant dense<0.000000e+00> : vector<4x8xf32>
    %119 = tpu.matmul %118, %117, %cst_51 {dimension_numbers = #tpu.dot_dimension_numbers<[1], [0], [0], [1], [0, 0, 1, 1], [], []>} : vector<4x8xf32>, vector<8x8xf32>, vector<4x8xf32> -> vector<4x8xf32>
    %120 = vector.extract_strided_slice %119 {offsets = [0, 0], sizes = [2, 8], strides = [1, 1]} : vector<4x8xf32> to vector<2x8xf32>
    %121 = vector.extract_strided_slice %119 {offsets = [2, 0], sizes = [2, 8], strides = [1, 1]} : vector<4x8xf32> to vector<2x8xf32>
    %122 = vector.extract_strided_slice %18 {offsets = [0, 0], sizes = [8, 1], strides = [1, 1]} : vector<8x2xf32> to vector<8x1xf32>
    %123 = vector.broadcast %122 : vector<8x1xf32> to vector<8x8xf32>
    %124 = arith.addf %117, %123 : vector<8x8xf32>
    %cst_52 = arith.constant dense<0xFF800000> : vector<8xf32>
    %125 = vector.multi_reduction <maximumf>, %124, %cst_52 [0] : vector<8x8xf32> to vector<8xf32>
    %126 = vector.shape_cast %125 : vector<8xf32> to vector<1x8xf32>
    %127 = vector.extract_strided_slice %18 {offsets = [0, 1], sizes = [8, 1], strides = [1, 1]} : vector<8x2xf32> to vector<8x1xf32>
    %128 = vector.broadcast %127 : vector<8x1xf32> to vector<8x8xf32>
    %129 = arith.addf %117, %128 : vector<8x8xf32>
    %cst_53 = arith.constant dense<0xFF800000> : vector<8xf32>
    %130 = vector.multi_reduction <maximumf>, %129, %cst_53 [0] : vector<8x8xf32> to vector<8xf32>
    %131 = vector.shape_cast %130 : vector<8xf32> to vector<1x8xf32>
    %132 = tpu.concatenate %126, %131 in 0 : vector<1x8xf32>, vector<1x8xf32> -> vector<2x8xf32>
    %c336 = arith.constant 336 : index
    %c0_54 = arith.constant 0 : index
    %133 = vector.load %arg6[%c336, %c0_54] : memref<432x32xf32, #tpu.memory_space<vmem>>, vector<8x32xf32>
    %cst_55 = arith.constant dense<0.000000e+00> : vector<2x32xf32>
    %134 = tpu.matmul %121, %133, %cst_55 {dimension_numbers = #tpu.dot_dimension_numbers<[1], [0], [0], [1], [0, 0, 1, 1], [], []>} : vector<2x8xf32>, vector<8x32xf32>, vector<2x32xf32> -> vector<2x32xf32>
    %c344 = arith.constant 344 : index
    %c0_56 = arith.constant 0 : index
    %135 = vector.load %arg6[%c344, %c0_56] : memref<432x32xf32, #tpu.memory_space<vmem>>, vector<8x32xf32>
    %cst_57 = arith.constant dense<0.000000e+00> : vector<2x32xf32>
    %136 = tpu.matmul %132, %135, %cst_57 {dimension_numbers = #tpu.dot_dimension_numbers<[1], [0], [0], [1], [0, 0, 1, 1], [], []>} : vector<2x8xf32>, vector<8x32xf32>, vector<2x32xf32> -> vector<2x32xf32>
    %137 = arith.addf %134, %136 : vector<2x32xf32>
    %c352 = arith.constant 352 : index
    %c0_58 = arith.constant 0 : index
    %138 = vector.load %arg6[%c352, %c0_58] : memref<432x32xf32, #tpu.memory_space<vmem>>, vector<8x32xf32>
    %cst_59 = arith.constant dense<0.000000e+00> : vector<2x32xf32>
    %139 = tpu.matmul %120, %138, %cst_59 {dimension_numbers = #tpu.dot_dimension_numbers<[1], [0], [0], [1], [0, 0, 1, 1], [], []>} : vector<2x8xf32>, vector<8x32xf32>, vector<2x32xf32> -> vector<2x32xf32>
    %140 = arith.addf %137, %139 : vector<2x32xf32>
    %c360 = arith.constant 360 : index
    %c0_60 = arith.constant 0 : index
    %141 = vector.load %arg6[%c360, %c0_60] : memref<432x32xf32, #tpu.memory_space<vmem>>, vector<1x32xf32>
    %142 = vector.broadcast %141 : vector<1x32xf32> to vector<2x32xf32>
    %143 = arith.addf %140, %142 : vector<2x32xf32>
    %cst_61 = arith.constant 0.000000e+00 : f32
    %144 = vector.broadcast %cst_61 : f32 to vector<2x32xf32>
    %145 = arith.maximumf %143, %144 : vector<2x32xf32>
    %c368 = arith.constant 368 : index
    %c0_62 = arith.constant 0 : index
    %146 = vector.load %arg6[%c368, %c0_62] : memref<432x32xf32, #tpu.memory_space<vmem>>, vector<32x16xf32>
    %cst_63 = arith.constant dense<0.000000e+00> : vector<2x16xf32>
    %147 = tpu.matmul %145, %146, %cst_63 {dimension_numbers = #tpu.dot_dimension_numbers<[1], [0], [0], [1], [0, 0, 1, 1], [], []>} : vector<2x32xf32>, vector<32x16xf32>, vector<2x16xf32> -> vector<2x16xf32>
    %c400 = arith.constant 400 : index
    %c0_64 = arith.constant 0 : index
    %148 = vector.load %arg6[%c400, %c0_64] : memref<432x32xf32, #tpu.memory_space<vmem>>, vector<1x16xf32>
    %149 = vector.broadcast %148 : vector<1x16xf32> to vector<2x16xf32>
    %150 = arith.addf %147, %149 : vector<2x16xf32>
    %cst_65 = arith.constant 0.000000e+00 : f32
    %151 = vector.broadcast %cst_65 : f32 to vector<2x16xf32>
    %152 = arith.maximumf %150, %151 : vector<2x16xf32>
    %c408 = arith.constant 408 : index
    %c0_66 = arith.constant 0 : index
    %153 = vector.load %arg6[%c408, %c0_66] : memref<432x32xf32, #tpu.memory_space<vmem>>, vector<16x1xf32>
    %cst_67 = arith.constant dense<0.000000e+00> : vector<2x1xf32>
    %154 = tpu.matmul %152, %153, %cst_67 {dimension_numbers = #tpu.dot_dimension_numbers<[1], [0], [0], [1], [0, 0, 1, 1], [], []>} : vector<2x16xf32>, vector<16x1xf32>, vector<2x1xf32> -> vector<2x1xf32>
    %c424 = arith.constant 424 : index
    %c0_68 = arith.constant 0 : index
    %155 = vector.load %arg6[%c424, %c0_68] : memref<432x32xf32, #tpu.memory_space<vmem>>, vector<1x1xf32>
    %156 = vector.broadcast %155 : vector<1x1xf32> to vector<2x1xf32>
    %157 = arith.addf %154, %156 : vector<2x1xf32>
    %c0_69 = arith.constant 0 : index
    %c0_70 = arith.constant 0 : index
    %158 = vector.load %arg7[%c0_69, %c0_70] : memref<2x1xf32, #tpu.memory_space<vmem>>, vector<2x1xf32>
    tpu.vector_store %arg7[%c0_69, %c0_70], %157 {strides = array<i32>} : memref<2x1xf32, #tpu.memory_space<vmem>>, vector<2x1xf32>,
    return
  }
}

</mosaic_0001>

<bundles_post_ra>
// kernel: tpu_custom_call.1
= control target key start
LH: loop header
LB: loop body
LE: loop exit
PB: predicated region body
PF: predicated region fallthrough
CT: control target
= control target key end

     0   :  { %v706_v0 = vmov 0   ;;  %vm104_vm0 = vcmask 1043456   ;;  %vm100_vm1 = vcmask 64512   ;;  %v27_v26 = vlaneseq  ;;  %s707_s18 = smov 120   ;;  %s991_s0 = inlined_call_operand.vmem [shape: f32[16,1], index: 0, kind: input, shape index: {}]   ;;  %s992_s1 = inlined_call_operand.vmem [shape: f32[8,10], index: 1, kind: input, shape index: {}]   ;;  %s993_s2 = inlined_call_operand.vmem [shape: bf16[16,8], index: 2, kind: input, shape index: {}]   ;;  %s994_s6 = inlined_call_operand.vmem [shape: f32[432,32], index: 6, kind: input, shape index: {}]   ;;  %s995_s3 = inlined_call_operand.vmem [shape: bf16[16,8], index: 3, kind: input, shape index: {}]   ;;  %s996_s4 = inlined_call_operand.vmem [shape: bf16[8,16], index: 4, kind: input, shape index: {}]   ;;  %s997_s5 = inlined_call_operand.vmem [shape: f32[4,8], index: 5, kind: input, shape index: {}]   ;;  %s998_s7 = inlined_call_operand.vmem [shape: f32[2,1], index: 7, kind: output, shape index: {}]  }
   0x1   :  { %665 = vset.pattern.permute.xlu0 %v706_v0  ;;  %v32_v1 = vld [vmem:[%s991_s0] sm:$0xff]  ;;  %v82_v6 = vld [vmem:[%s994_s6 + $0x88] sm:$0xff]  ;;  %v79_v11 = vld [vmem:[%s994_s6 + $0x70] sm:$0xff]  ;;  %vm242_vm2 = vcmask 130048   ;;  %vm492_vm3 = vcmask 1040384   ;;  %vm577_vm4 = vcmask 261120  }
   0x2   :  { %v756_v2 = vld [vmem:[%s992_s1] sm:$0xff]  ;;  %36 = vperm.xlu0 %665, %v32_v1   ;;  %v33_v10 = vld [vmem:[%s991_s0 + $0x8] sm:$0xff]  ;;  %v80_v12 = vld [vmem:[%s994_s6 + $0x78] sm:$0xff]  ;;  %v28_v30 = vand.u32 127, %v27_v26  ;;  %vm629_vm5 = vcmask 1024  }
   0x3   :  { %v94_v3 = vpack.c.bf16 %v756_v2, %v756_v2  ;;  %v763_v4 = vld [vmem:[%s993_s2] sm:$0xff]  ;;  %v89_v13 = vpack.c.bf16 %v80_v12, %v79_v11  ;;  %v78_v15 = vld [vmem:[%s994_s6 + $0x68] sm:$0xff]  ;;  %v75_v17 = vld [vmem:[%s994_s6 + $0x50] sm:$0xff] }
   0x4   :  { %v81_v5 = vld [vmem:[%s994_s6 + $0x80] sm:$0xff]  ;;  %v76_v18 = vld [vmem:[%s994_s6 + $0x58] sm:$0xff]  ;;  %v74_v21 = vld [vmem:[%s994_s6 + $0x48] sm:$0xff]  ;;  %v29_v40 = vcvt.s32.f32 %v28_v30 }
   0x5   :  { %v106_v7 = vsel %vm104_vm0, %v94_v3, 0  ;;  %v775_v8 = vld [vmem:[%s995_s3] sm:$0xff]  ;;  %v90_v9 = vpack.c.bf16 %v82_v6, %v81_v5  ;;  %v87_v19 = vpack.c.bf16 %v76_v18, %v75_v17  ;;  %v71_v23 = vld [vmem:[%s994_s6 + $0x30] sm:$0xff]  ;;  %v72_v24 = vld [vmem:[%s994_s6 + $0x38] sm:$0xff] }
   0x6   :  { %115 = vmatpush.bf16.msra.mxu0 %v106_v7  ;;  %137 = vmatpush.bf16.msra.mxu1 %v106_v7  ;;  %v77_v14 = vld [vmem:[%s994_s6 + $0x60] sm:$0xff]  ;;  %v85_v25 = vpack.c.bf16 %v72_v24, %v71_v23  ;;  %v70_v28 = vld [vmem:[%s994_s6 + $0x28] sm:$0xff]  ;;  %v67_v35 = vld [vmem:[%s994_s6 + $0x10] sm:$0xff]  ;;  %v30_v41 = vmul.f32 0.05050505, %v29_v40 }
   0x7   :  { %v88_v16 = vpack.c.bf16 %v78_v15, %v77_v14  ;;  %v73_v20 = vld [vmem:[%s994_s6 + $0x40] sm:$0xff]  ;;  %v65_v31 = vld [vmem:[%s994_s6 + $0x8] sm:$0xff]  ;;  %v68_v36 = vld [vmem:[%s994_s6 + $0x18] sm:$0xff] }
   0x8   :  { %v86_v22 = vpack.c.bf16 %v74_v21, %v73_v20  ;;  %v69_v27 = vld [vmem:[%s994_s6 + $0x20] sm:$0xff]  ;;  %v66_v33 = vpack.c.bf16 %v65_v31, %v65_v31  ;;  %v83_v37 = vpack.c.bf16 %v68_v36, %v67_v35  ;;  %v669_v5 = vld [vmem:[%s994_s6 + $0x90] ss:$0 sm:$0xff] }
   0x9   :  { %639 = vmatmul.msk.bf16.vlgmr.msra.gmra.mxu0 %vm100_vm1, %v763_v4  ;;  %644 = vmatmul.msk.bf16.vlgmr.msra.gmra.mxu1 %vm100_vm1, %v775_v8  ;;  %v84_v29 = vpack.c.bf16 %v70_v28, %v69_v27  ;;  %v63_v32 = vld [vmem:[%s994_s6] sm:$0xff] }
   0xa   :  { %186 = vmatpush.bf16.msrb.mxu0 %v90_v9  ;;  %41 = vperm.xlu0 %665, %v33_v10   ;;  %v64_v34 = vpack.c.bf16 %v63_v32, %v63_v32  ;;  %v150_v38 = vsel %vm104_vm0, %v66_v33, 0 }
   0xb   :  { %159 = vmatpush.bf16.msra.mxu2 %v150_v38 }
   0xc   :  { %v170_v39 = vsel %vm104_vm0, %v64_v34, 0 }
   0xd   :  { %179 = vmatpush.bf16.msra.mxu3 %v170_v39 }
   0xe   :  { %187 = vmatpush.bf16.msrb.mxu0 %v89_v13 }
  0x12   :  { %188 = vmatpush.bf16.msrb.mxu0 %v88_v16 }
  0x16   :  { %189 = vmatpush.bf16.msrb.mxu0 %v87_v19 }
  0x1a   :  { %190 = vmatpush.bf16.msrb.mxu0 %v86_v22 }
  0x1e   :  { %191 = vmatpush.bf16.msrb.mxu0 %v85_v25 }
  0x22   :  { %192 = vmatpush.bf16.msrb.mxu0 %v84_v29 }
  0x26   :  { %193 = vmatpush.bf16.msrb.mxu0 %v83_v37 }
  0x74   :  { %v37_v42 = vpop.permute.xlu0 %36 }
  0x75   :  { %v44_v43 = vsub.f32 %v37_v42, %v30_v41 }
  0x77   :  { %v46_v44 = vmul.f32 %v44_v43, %v44_v43 }
  0x79   :  { %v48_v45 = vsub.f32 0.0, %v46_v44 }
  0x7b   :  { %v50_v47 = vmul.f32 392.04, %v48_v45 }
  0x7c   :  { %v42_v46 = vpop.permute.xlu0 %41 }
  0x7d   :  { %v45_v48 = vsub.f32 %v42_v46, %v30_v41  ;;  %v52_v50 = vmul.f32 1.442695, %v50_v47  ;;  %v847_v46 = vld [vmem:[%s996_s4] sm:$0xf]  ;;  %v670_v47 = vld [vmem:[%s994_s6 + $0x98] ss:$0 sm:$0xff] }
  0x7f   :  { %v47_v49 = vmul.f32 %v45_v48, %v45_v48  ;;  %678 = vpow2.f32 %v52_v50  ;;  %v671_v50 = vld [vmem:[%s994_s6 + $0xa0] ss:$0 sm:$0xff] }
  0x81   :  { %v49_v51 = vsub.f32 0.0, %v47_v49 }
  0x83   :  { %v51_v52 = vmul.f32 392.04, %v49_v51 }
  0x85   :  { %v54_v53 = vmul.f32 1.442695, %v51_v52  ;;  %v679_v56 = vpop.eup %678  ;;  %v282_v52 = vld [vmem:[%s994_s6 + $0x128] sm:$0xff] }
  0x86   :  { %v117_v54 = vpop.f32.mrf.mxu0  ;;  %v139_v55 = vpop.f32.mrf.mxu1 }
  0x87   :  { %680 = vpow2.f32 %v54_v53  ;;  %v283_v53 = vld [vmem:[%s994_s6 + $0x130] sm:$0xff] }
  0x8d   :  { %v681_v57 = vpop.eup %680 }
  0x8e   :  { %v119_v58 = vpop.f32.mrf.mxu0  ;;  %v141_v59 = vpop.f32.mrf.mxu1  ;;  %v834_v62 = vpack.c.bf16 %v681_v57, %v679_v56  ;;  %v291_v56 = vpack.c.bf16 %v283_v53, %v282_v52 }
  0x8f   :  { %v145_v60 = vpack.c.bf16 %v119_v58, %v117_v54  ;;  %v144_v61 = vpack.c.bf16 %v141_v59, %v139_v55  ;;  %v280_v58 = vld [vmem:[%s994_s6 + $0x118] sm:$0xff]  ;;  %v281_v59 = vld [vmem:[%s994_s6 + $0x120] sm:$0xff] }
  0x90   :  { %194 = vmatmul.bf16.vlgmr.msrb.gmra.mxu0 %v834_v62 }
  0x91   :  { %645 = vmatmul.msk.bf16.vlgmr.msra.gmra.mxu2 %vm100_vm1, %v145_v60  ;;  %646 = vmatmul.msk.bf16.vlgmr.msra.gmra.mxu3 %vm100_vm1, %v144_v61  ;;  %v290_v61 = vpack.c.bf16 %v281_v59, %v280_v58 }
 0x10d   :  { %v195_v63 = vpop.f32.mrf.mxu0 }
 0x114   :  { %v161_v0 = vpop.f32.mrf.mxu2  ;;  %v181_v1 = vpop.f32.mrf.mxu3 }
 0x115   :  { %v182_v3 = vadd.f32 %v181_v1, %v161_v0  ;;  %v197_v14 = vpop.f32.mrf.mxu0  ;;  %v279_v0 = vld [vmem:[%s994_s6 + $0x110] sm:$0xff] }
 0x117   :  { %v200_v6 = vadd.f32 %v195_v63, %v182_v3  ;;  %v278_v63 = vld [vmem:[%s994_s6 + $0x108] sm:$0xff]  ;;  %v276_v3 = vld [vmem:[%s994_s6 + $0xf8] sm:$0xff] }
 0x118   :  { %v289_v1 = vpack.c.bf16 %v279_v0, %v278_v63  ;;  %v708_v63 = vmov 9   ;;  %v709_v0 = vmov 8  }
 0x119   :  { %v203_v7 = vadd.f32 %v669_v5, %v200_v6  ;;  %667 = vset.pattern.permute.xlu1 %v708_v63  ;;  %666 = vset.pattern.permute.xlu0 %v709_v0  ;;  %v677_v0 = vld [vmem:[%s994_s6 + $0x1a8] ss:$0 sm:$0xff] }
 0x11a   :  { %469 = vperm.xlu0 %666, %v756_v2  }
 0x11b   :  { %v215_v9 = vand.u32 2147483647, %v203_v7  ;;  %v213_v26 = vmax.f32 %v203_v7, 0.0  ;;  %v205_v33 = vmul.f32 0.5, %v203_v7  ;;  %v274_v7 = vld [vmem:[%s994_s6 + $0xe8] sm:$0xff] }
 0x11c   :  { %v163_v10 = vpop.f32.mrf.mxu2  ;;  %v183_v11 = vpop.f32.mrf.mxu3 }
 0x11d   :  { %v184_v12 = vadd.f32 %v183_v11, %v163_v10  ;;  %v217_v13 = vsub.f32 0.0, %v215_v9  ;;  %v272_v9 = vld [vmem:[%s994_s6 + $0xd8] sm:$0xff]  ;;  %v273_v10 = vld [vmem:[%s994_s6 + $0xe0] sm:$0xff] }
 0x11e   :  { %v286_v11 = vpack.c.bf16 %v273_v10, %v272_v9 }
 0x11f   :  { %v201_v15 = vadd.f32 %v197_v14, %v184_v12  ;;  %v219_v16 = vmul.f32 1.442695, %v217_v13  ;;  %v270_v12 = vld [vmem:[%s994_s6 + $0xc8] sm:$0xff]  ;;  %v271_v13 = vld [vmem:[%s994_s6 + $0xd0] sm:$0xff] }
 0x120   :  { %v285_v14 = vpack.c.bf16 %v271_v13, %v270_v12 }
 0x121   :  { %v204_v17 = vadd.f32 %v669_v5, %v201_v15  ;;  %682 = vpow2.f32 %v219_v16  ;;  %v277_v5 = vld [vmem:[%s994_s6 + $0x100] sm:$0xff]  ;;  %v268_v15 = vld [vmem:[%s994_s6 + $0xb8] sm:$0xff] }
 0x122   :  { %v288_v6 = vpack.c.bf16 %v277_v5, %v276_v3  ;;  %v269_v16 = vld [vmem:[%s994_s6 + $0xc0] sm:$0xff]  ;;  %668 = vset.pattern.permute.xlu0 %v708_v63 }
 0x123   :  { %v216_v18 = vand.u32 2147483647, %v204_v17  ;;  %v214_v30 = vmax.f32 %v204_v17, 0.0  ;;  %v206_v34 = vmul.f32 0.5, %v204_v17  ;;  %v284_v17 = vpack.c.bf16 %v269_v16, %v268_v15  ;;  %v673_v15 = vld [vmem:[%s994_s6 + $0x140] ss:$0 sm:$0xff] }
 0x125   :  { %v218_v19 = vsub.f32 0.0, %v216_v18  ;;  %v266_v18 = vld [vmem:[%s994_s6 + $0xb0] sm:$0xff] }
 0x127   :  { %v683_v20 = vpop.eup %682  ;;  %v221_v21 = vmul.f32 1.442695, %v218_v19  ;;  %v264_v19 = vld [vmem:[%s994_s6 + $0xa8] sm:$0xff] }
 0x128   :  { %v223_v22 = vadd.f32 1.0, %v683_v20  ;;  %v267_v20 = vpack.c.bf16 %v266_v18, %v266_v18  ;;  %v674_v18 = vld [vmem:[%s994_s6 + $0x148] ss:$0 sm:$0xff] }
 0x129   :  { %684 = vpow2.f32 %v221_v21  ;;  %v265_v21 = vpack.c.bf16 %v264_v19, %v264_v19 }
 0x12a   :  { %686 = vlog2.f32 %v223_v22  ;;  %v333_v22 = vsel %vm104_vm0, %v267_v20, 0 }
 0x12f   :  { %v685_v23 = vpop.eup %684 }
 0x130   :  { %v687_v24 = vpop.eup %686  ;;  %v224_v25 = vadd.f32 1.0, %v685_v23  ;;  %v353_v23 = vsel %vm104_vm0, %v265_v21, 0 }
 0x131   :  { %v226_v27 = vmul.f32 0.6931472, %v687_v24 }
 0x132   :  { %688 = vlog2.f32 %v224_v25 }
 0x133   :  { %v229_v28 = vadd.f32 %v226_v27, %v213_v26  ;;  %690 = vtanh.f32 %v205_v33  ;;  %v672_v33 = vld [vmem:[%s994_s6 + $0x138] ss:$0 sm:$0xff] }
 0x134   :  { %692 = vtanh.f32 %v206_v34 }
 0x135   :  { %233 = vrot.lane.b32.xlu1 %v229_v28, %s707_s18 }
 0x138   :  { %v689_v29 = vpop.eup %688 }
 0x139   :  { %v228_v31 = vmul.f32 0.6931472, %v689_v29  ;;  %v691_v35 = vpop.eup %690 }
 0x13a   :  { %v693_v36 = vpop.eup %692  ;;  %v209_v38 = vadd.f32 1.0, %v691_v35 }
 0x13b   :  { %v230_v32 = vadd.f32 %v228_v31, %v214_v30  ;;  %v210_v39 = vadd.f32 1.0, %v693_v36 }
 0x13c   :  { %v211_v40 = vmul.f32 0.5, %v209_v38 }
 0x13d   :  { %235 = vrot.lane.b32.xlu1 %v230_v32, %s707_s18  ;;  %v212_v41 = vmul.f32 0.5, %v210_v39 }
 0x145   :  { %481 = vperm.xlu1 %667, %v756_v2  }
 0x18c   :  { %v470_v21 = vpop.permute.xlu0 %469 }
 0x1a7   :  { %v234_v37 = vpop.permute.xlu1 %233 }
 0x1a8   :  { %v239_v43 = vmul.f32 %v234_v37, %v211_v40 }
 0x1af   :  { %v236_v42 = vpop.permute.xlu1 %235 }
 0x1b0   :  { %v240_v44 = vmul.f32 %v236_v42, %v212_v41 }
 0x1b2   :  { %v241_v45 = vpack.c.bf16 %v240_v44, %v239_v43 }
 0x1b4   :  { %253 = vmatpush.bf16.msrb.mxu1 %v241_v45 }
 0x1b7   :  { %647 = vmatmul.msk.bf16.vlgmr.msrb.gmra.mxu1 %vm242_vm2, %v847_v46  ;;  %v482_v20 = vpop.permute.xlu1 %481 }
 0x1b8   :  { %342 = vmatpush.bf16.msra.mxu1 %v333_v22  ;;  %v443_v22 = vld [vmem:[%s997_s5] sm:$0xf] }
 0x234   :  { %v255_v48 = vpop.f32.mrf.mxu1 }
 0x235   :  { %v260_v49 = vmul.f32 %v670_v47, %v255_v48 }
 0x237   :  { %v261_v51 = vadd.f32 %v260_v49, %v756_v2  ;;  %v495_v2 = vld [vmem:[%s994_s6 + $0x158] sm:$0xff] }
 0x239   :  { %v864_v54 = vadd.f32 %v671_v50, %v261_v51 }
 0x23b   :  { %v295_v55 = vpack.c.bf16 %v864_v54, %v864_v54 }
 0x23c   :  { %v257_v57 = vpop.f32.mrf.mxu1 }
 0x23d   :  { %v297_v60 = vsel %vm104_vm0, %v295_v55, 0 }
 0x23e   :  { %306 = vmatpush.bf16.msrb.mxu2 %v297_v60  ;;  %320 = vmatpush.bf16.msrb.mxu3 %v297_v60 }
 0x241   :  { %648 = vmatmul.msk.bf16.vlgmr.msrb.gmra.mxu2 %vm100_vm1, %v763_v4  ;;  %649 = vmatmul.msk.bf16.vlgmr.msrb.gmra.mxu3 %vm100_vm1, %v775_v8  ;;  %v275_v4 = vld [vmem:[%s994_s6 + $0xf0] sm:$0xff] }
 0x242   :  { %369 = vmatpush.bf16.msra.mxu3 %v291_v56  ;;  %v287_v8 = vpack.c.bf16 %v275_v4, %v274_v7  ;;  %362 = vmatpush.bf16.msra.mxu2 %v353_v23 }
 0x246   :  { %370 = vmatpush.bf16.msra.mxu3 %v290_v61  ;;  %514 = vmatpush.msrb.mxu2 %v495_v2 }
 0x24a   :  { %371 = vmatpush.bf16.msra.mxu3 %v289_v1 }
 0x24e   :  { %372 = vmatpush.bf16.msra.mxu3 %v288_v6 }
 0x252   :  { %373 = vmatpush.bf16.msra.mxu3 %v287_v8 }
 0x256   :  { %374 = vmatpush.bf16.msra.mxu3 %v286_v11 }
 0x25a   :  { %375 = vmatpush.bf16.msra.mxu3 %v285_v14 }
 0x25e   :  { %376 = vmatpush.bf16.msra.mxu3 %v284_v17 }
 0x261   :  { %377 = vmatmul.bf16.vlgmr.msra.gmra.mxu3 %v834_v62 }
 0x2c4   :  { %v308_v24 = vpop.f32.mrf.mxu2  ;;  %v322_v25 = vpop.f32.mrf.mxu3 }
 0x2cc   :  { %v310_v26 = vpop.f32.mrf.mxu2  ;;  %v324_v62 = vpop.f32.mrf.mxu3 }
 0x2cd   :  { %v328_v27 = vpack.c.bf16 %v310_v26, %v308_v24  ;;  %v327_v28 = vpack.c.bf16 %v324_v62, %v322_v25 }
 0x2cf   :  { %650 = vmatmul.msk.bf16.vlgmr.msra.gmra.mxu1 %vm100_vm1, %v328_v27  ;;  %651 = vmatmul.msk.bf16.vlgmr.msra.gmra.mxu2 %vm100_vm1, %v327_v28 }
 0x2e4   :  { %v378_v30 = vpop.f32.mrf.mxu3 }
 0x2ec   :  { %v380_v41 = vpop.f32.mrf.mxu3 }
 0x34c   :  { %v344_v29 = vpop.f32.mrf.mxu1 }
 0x352   :  { %v364_v31 = vpop.f32.mrf.mxu2 }
 0x353   :  { %v365_v32 = vadd.f32 %v364_v31, %v344_v29 }
 0x354   :  { %v346_v37 = vpop.f32.mrf.mxu1 }
 0x355   :  { %v383_v34 = vadd.f32 %v378_v30, %v365_v32 }
 0x357   :  { %v386_v35 = vadd.f32 %v672_v33, %v383_v34 }
 0x359   :  { %v398_v36 = vand.u32 2147483647, %v386_v35  ;;  %v396_v55 = vmax.f32 %v386_v35, 0.0  ;;  %v388_v1 = vmul.f32 0.5, %v386_v35 }
 0x35a   :  { %v366_v38 = vpop.f32.mrf.mxu2 }
 0x35b   :  { %v367_v39 = vadd.f32 %v366_v38, %v346_v37  ;;  %v400_v40 = vsub.f32 0.0, %v398_v36 }
 0x35d   :  { %v384_v42 = vadd.f32 %v380_v41, %v367_v39  ;;  %v402_v43 = vmul.f32 1.442695, %v400_v40  ;;  %v543_v39 = vld [vmem:[%s994_s6 + $0x160] sm:$0xff]  ;;  %v494_v40 = vld [vmem:[%s994_s6 + $0x150] sm:$0xff] }
 0x35e   :  { %561 = vmatpush.msra.mxu2 %v543_v39 }
 0x35f   :  { %v387_v44 = vadd.f32 %v672_v33, %v384_v42  ;;  %694 = vpow2.f32 %v402_v43  ;;  %v574_v43 = vld [vmem:[%s994_s6 + $0x188] sm:$0xff] }
 0x361   :  { %v399_v45 = vand.u32 2147483647, %v387_v44  ;;  %v397_v59 = vmax.f32 %v387_v44, 0.0  ;;  %v389_v3 = vmul.f32 0.5, %v387_v44  ;;  %v573_v44 = vld [vmem:[%s994_s6 + $0x180] sm:$0xff] }
 0x363   :  { %v401_v47 = vsub.f32 0.0, %v399_v45  ;;  %v572_v45 = vld [vmem:[%s994_s6 + $0x178] sm:$0xff] }
 0x365   :  { %v695_v48 = vpop.eup %694  ;;  %v404_v49 = vmul.f32 1.442695, %v401_v47  ;;  %v571_v47 = vld [vmem:[%s994_s6 + $0x170] sm:$0xff] }
 0x366   :  { %v406_v50 = vadd.f32 1.0, %v695_v48 }
 0x367   :  { %696 = vpow2.f32 %v404_v49 }
 0x368   :  { %698 = vlog2.f32 %v406_v50 }
 0x36d   :  { %v697_v51 = vpop.eup %696 }
 0x36e   :  { %v699_v52 = vpop.eup %698  ;;  %v407_v53 = vadd.f32 1.0, %v697_v51  ;;  %v675_v51 = vld [vmem:[%s994_s6 + $0x168] ss:$0 sm:$0xff] }
 0x36f   :  { %v409_v56 = vmul.f32 0.6931472, %v699_v52 }
 0x370   :  { %700 = vlog2.f32 %v407_v53 }
 0x371   :  { %v412_v57 = vadd.f32 %v409_v56, %v396_v55  ;;  %702 = vtanh.f32 %v388_v1 }
 0x372   :  { %704 = vtanh.f32 %v389_v3 }
 0x373   :  { %416 = vrot.lane.b32.xlu2 %v412_v57, %s707_s18  ;;  %v603_v57 = vld [vmem:[%s994_s6 + $0x1a0] sm:$0xff] }
 0x376   :  { %v701_v58 = vpop.eup %700 }
 0x377   :  { %v411_v60 = vmul.f32 0.6931472, %v701_v58  ;;  %v703_v5 = vpop.eup %702  ;;  %v602_v58 = vld [vmem:[%s994_s6 + $0x198] sm:$0xff] }
 0x378   :  { %v705_v6 = vpop.eup %704  ;;  %v392_v4 = vadd.f32 1.0, %v703_v5 }
 0x379   :  { %v413_v61 = vadd.f32 %v411_v60, %v397_v59  ;;  %v393_v8 = vadd.f32 1.0, %v705_v6  ;;  %v676_v59 = vld [vmem:[%s994_s6 + $0x190] ss:$0 sm:$0xff] }
 0x37a   :  { %v394_v9 = vmul.f32 0.5, %v392_v4 }
 0x37b   :  { %418 = vrot.lane.b32.xlu2 %v413_v61, %s707_s18  ;;  %v395_v10 = vmul.f32 0.5, %v393_v8 }
 0x3cd   :  { %v417_v7 = vpop.permute.xlu2 %416 }
 0x3ce   :  { %v422_v12 = vmul.f32 %v417_v7, %v394_v9 }
 0x3d5   :  { %v419_v11 = vpop.permute.xlu2 %418 }
 0x3d6   :  { %v423_v13 = vmul.f32 %v419_v11, %v395_v10 }
 0x3d8   :  { %v424_v14 = vpack.c.bf16 %v423_v13, %v422_v12 }
 0x3da   :  { %432 = vmatpush.bf16.msra.mxu0 %v424_v14 }
 0x3dd   :  { %652 = vmatmul.msk.bf16.vlgmr.msra.gmra.mxu0 %vm242_vm2, %v847_v46 }
 0x3de   :  { %593 = vmatpush.msrb.mxu0 %v574_v43 }
 0x3e0   :  { %594 = vmatpush.msrb.mxu0 %v573_v44 }
 0x3e2   :  { %595 = vmatpush.msrb.mxu0 %v572_v45 }
 0x3e4   :  { %596 = vmatpush.msrb.mxu0 %v571_v47 }
 0x45a   :  { %v434_v16 = vpop.f32.mrf.mxu0 }
 0x45b   :  { %v439_v17 = vmul.f32 %v673_v15, %v434_v16 }
 0x45d   :  { %v440_v19 = vadd.f32 %v439_v17, %v864_v54 }
 0x45f   :  { %v442_v46 = vadd.f32 %v674_v18, %v440_v19 }
 0x461   :  { %v484_v23 = vadd.f32 %v482_v20, %v442_v46  ;;  %v472_v24 = vadd.f32 %v470_v21, %v442_v46  ;;  %462 = vmatpush.msrb.mxu1 %v442_v46 }
 0x462   :  { %v436_v25 = vpop.f32.mrf.mxu0  ;;  %653 = vmatmul.msk.f32.vlgmr.msrb.gmra.mxu1 %vm100_vm1, %v443_v22 }
 0x463   :  { %v485_v26 = vsel %vm100_vm1, %v484_v23, -inf  ;;  %v473_v62 = vsel %vm100_vm1, %v472_v24, -inf  ;;  %538 = vmatpush.msra.mxu1 %v494_v40 }
 0x464   :  { %v486_v27 = vrot.slane %v485_v26, 4  ;;  %v474_v28 = vrot.slane %v473_v62, 4 }
 0x465   :  { %623 = vmatpush.msrb.mxu1 %v603_v57 }
 0x466   :  { %v487_v54 = vmax.f32 %v485_v26, %v486_v27  ;;  %v475_v29 = vmax.f32 %v473_v62, %v474_v28 }
 0x467   :  { %624 = vmatpush.msrb.mxu1 %v602_v58 }
 0x468   :  { %v488_v30 = vrot.slane %v487_v54, 2  ;;  %v476_v31 = vrot.slane %v475_v29, 2 }
 0x46a   :  { %v489_v32 = vmax.f32 %v487_v54, %v488_v30  ;;  %v477_v33 = vmax.f32 %v475_v29, %v476_v31 }
 0x46c   :  { %v490_v34 = vrot.slane %v489_v32, 1  ;;  %v478_v35 = vrot.slane %v477_v33, 1 }
 0x46e   :  { %v491_v36 = vmax.f32 %v489_v32, %v490_v34  ;;  %v479_v37 = vmax.f32 %v477_v33, %v478_v35 }
 0x470   :  { %v493_v38 = vsel %vm492_vm3, %v479_v37, %v491_v36 }
 0x471   :  { %654 = vmatmul.msk.f32.vlgmr.msrb.gmra.mxu2 %vm100_vm1, %v493_v38 }
 0x4df   :  { %v464_v41 = vpop.f32.mrf.mxu1 }
 0x4e0   :  { %v520_v42 = vrot.slane %v464_v41, 2  ;;  %656 = vmatmul.msk.f32.vlgmr.msra.gmra.mxu2 %vm100_vm1, %v464_v41 }
 0x4e2   :  { %655 = vmatmul.msk.f32.vlgmr.msra.gmra.mxu1 %vm100_vm1, %v520_v42 }
 0x4f4   :  { %v516_v48 = vpop.f32.mrf.mxu2 }
 0x55f   :  { %v540_v49 = vpop.f32.mrf.mxu1 }
 0x560   :  { %v541_v50 = vadd.f32 %v540_v49, %v516_v48 }
 0x563   :  { %v563_v52 = vpop.f32.mrf.mxu2 }
 0x564   :  { %v566_v53 = vadd.f32 %v563_v52, %v541_v50 }
 0x566   :  { %v569_v55 = vadd.f32 %v675_v51, %v566_v53 }
 0x568   :  { %v570_v56 = vmax.f32 %v569_v55, 0.0 }
 0x56a   :  { %657 = vmatmul.msk.f32.vlgmr.msrb.gmra.mxu0 %vm577_vm4, %v570_v56 }
 0x5e7   :  { %v598_v60 = vpop.f32.mrf.mxu0 }
 0x5e8   :  { %v599_v61 = vadd.f32 %v676_v59, %v598_v60 }
 0x5ea   :  { %v601_v63 = vmax.f32 %v599_v61, 0.0 }
 0x5ec   :  { %658 = vmatmul.msk.f32.vlgmr.msrb.gmra.mxu1 %vm242_vm2, %v601_v63 }
 0x669   :  { %v626_v1 = vpop.f32.mrf.mxu1 }
 0x66a   :  { %v627_v3 = vadd.f32 %v677_v0, %v626_v1 }
 0x66c   :  { %630 = vst.msk [vmem:[%s998_s7] sm:$0x3] %vm629_vm5, %v627_v3 }

</bundles_post_ra>
